<compile_context>
chip_gen: v7x
topology: tpu7x:2x2x1
jax: 0.10.0
libtpu: 0.0.40
codegen_flags: <defaults>
</compile_context>

<pallas_src>
import math
import functools

import jax
import jax.numpy as jnp
from jax.experimental import pallas as pl
from jax.experimental.pallas import tpu as pltpu


def _round_up(x, m):
    return ((x + m - 1) // m) * m


def _lstm_cell_kernel(xh_ref, w_ref, b_ref, c0_ref, h1_ref, c1_ref, *, hp):
    """One fused LSTM-cell step on a (BB, ...) batch tile.

    xh_ref: (BB, Kp)       concatenated [x | h0] tile (Kp = Dp + Hp)
    w_ref:  (Kp, 4*Hp)     pre-transposed, gate-block-padded [W_ih^T ; W_hh^T]
    b_ref:  (1, 4*Hp)      fused bias (b_ih + b_hh), f32
    c0_ref: (BB, Hp)       previous cell-state tile
    h1_ref/c1_ref: (BB, Hp) new state tiles (outputs)
    """
    # Single MXU GEMM for both projections; f32 accumulation.
    gates = jnp.dot(xh_ref[...], w_ref[...],
                    preferred_element_type=jnp.float32) + b_ref[...]  # (BB, 4*Hp)

    def _sigmoid(z):
        # sigmoid(z) = 0.5 * (tanh(z/2) + 1): a single EUP op per element.
        return 0.5 * jnp.tanh(0.5 * z) + 0.5

    # Lane-aligned gate slices (Hp is a multiple of 128). Gate order matches
    # the module: [i, f, g(candidate), o].
    i_g = _sigmoid(gates[:, 0 * hp:1 * hp])
    f_g = _sigmoid(gates[:, 1 * hp:2 * hp])
    g_g = jnp.tanh(gates[:, 2 * hp:3 * hp])
    o_g = _sigmoid(gates[:, 3 * hp:4 * hp])

    c1 = f_g * c0_ref[...].astype(jnp.float32) + i_g * g_g
    h1 = o_g * jnp.tanh(c1)

    c1_ref[...] = c1.astype(c1_ref.dtype)
    h1_ref[...] = h1.astype(h1_ref.dtype)


def lstm_cell_tied_forward(x, w_ih, w_hh, b_ih, b_hh, hidden=(None, None)):
    """Eval-mode forward of LSTMcell_tied.

    x:      (B, D)
    w_ih:   (4H, D), w_hh: (4H, H), b_ih/b_hh: (4H,)  (PyTorch layout)
    hidden: (h0, c0) each (B, H) or None (-> zeros)
    returns (h1, c1), each (B, H)
    """
    B, D = x.shape
    H = w_ih.shape[0] // 4
    dtype = x.dtype

    h0, c0 = hidden
    if h0 is None:
        h0 = jnp.zeros((B, H), dtype=dtype)
    if c0 is None:
        c0 = jnp.zeros((B, H), dtype=dtype)

    # --- Pad everything to the (8, 128) vreg tile --------------------------
    Dp = _round_up(D, 128)
    Hp = _round_up(H, 128)
    Kp = Dp + Hp
    Bp = _round_up(B, 8)
    if Bp > 256:                       # tile large batches; grid is "parallel"
        BB = 256
        Bp = _round_up(Bp, BB)
    else:
        BB = Bp

    # Repack weights: (4H, in) -> (in_p, 4*Hp), keeping each gate's H columns
    # padded to Hp so gate slices in the kernel are lane-aligned.
    def _pack_w(w, in_dim, in_dim_p):
        w4 = w.reshape(4, H, in_dim)
        w4 = jnp.pad(w4, ((0, 0), (0, Hp - H), (0, in_dim_p - in_dim)))
        return w4.transpose(2, 0, 1).reshape(in_dim_p, 4 * Hp).astype(dtype)

    w_ih_p = _pack_w(w_ih, D, Dp)                       # (Dp, 4*Hp)
    w_hh_p = _pack_w(w_hh, H, Hp)                       # (Hp, 4*Hp)
    w_p = jnp.concatenate([w_ih_p, w_hh_p], axis=0)     # (Kp, 4*Hp)

    bias = (jnp.asarray(b_ih, jnp.float32)
            + jnp.asarray(b_hh, jnp.float32)).reshape(4, H)
    bias_p = jnp.pad(bias, ((0, 0), (0, Hp - H))).reshape(1, 4 * Hp)

    x_p = jnp.pad(x, ((0, Bp - B), (0, Dp - D)))
    h0_p = jnp.pad(h0, ((0, Bp - B), (0, Hp - H)))
    xh_p = jnp.concatenate([x_p, h0_p], axis=1)          # (Bp, Kp)
    c0_p = jnp.pad(c0, ((0, Bp - B), (0, Hp - H)))

    kernel = functools.partial(_lstm_cell_kernel, hp=Hp)

    h1_p, c1_p = pl.pallas_call(
        kernel,
        out_shape=(
            jax.ShapeDtypeStruct((Bp, Hp), dtype),
            jax.ShapeDtypeStruct((Bp, Hp), dtype),
        ),
        grid_spec=pltpu.PrefetchScalarGridSpec(
            num_scalar_prefetch=0,
            grid=(Bp // BB,),
            in_specs=[
                pl.BlockSpec((BB, Kp), lambda b: (b, 0)),          # [x | h0] tile
                pl.BlockSpec((Kp, 4 * Hp), lambda b: (0, 0)),      # fused weights
                pl.BlockSpec((1, 4 * Hp), lambda b: (0, 0)),       # fused bias
                pl.BlockSpec((BB, Hp), lambda b: (b, 0)),          # c0 tile
            ],
            out_specs=[
                pl.BlockSpec((BB, Hp), lambda b: (b, 0)),          # h1 tile
                pl.BlockSpec((BB, Hp), lambda b: (b, 0)),          # c1 tile
            ],
        ),
        compiler_params=pltpu.CompilerParams(
            dimension_semantics=("parallel",)),
    )(xh_p, w_p, bias_p, c0_p)

    return h1_p[:B, :H], c1_p[:B, :H]


def _reference_cell(x, w_ih, w_hh, b_ih, b_hh, h0, c0):
    """Pure-JAX reference matching LSTMcell_tied.forward (eval mode)."""
    H = w_hh.shape[1]
    gates = x @ w_ih.T + b_ih + h0 @ w_hh.T + b_hh
    i = jax.nn.sigmoid(gates[:, 0 * H:1 * H])
    f = jax.nn.sigmoid(gates[:, 1 * H:2 * H])
    g = jnp.tanh(gates[:, 2 * H:3 * H])
    o = jax.nn.sigmoid(gates[:, 3 * H:4 * H])
    c1 = f * c0 + i * g
    h1 = o * jnp.tanh(c1)
    return h1, c1


if __name__ == "__main__":
    # Module hyperparameters (small, consistent with LSTMcell_tied.__init__).
    inputSize = 16
    hiddenSize = 32
    batch = 2

    key = jax.random.PRNGKey(0)
    k_x, k_h, k_c, k_wih, k_whh, k_bih, k_bhh = jax.random.split(key, 7)

    # Deterministic init: uniform(-stdv, stdv), stdv = 1/sqrt(H).
    stdv = 1.0 / math.sqrt(hiddenSize)
    w_ih = jax.random.uniform(k_wih, (4 * hiddenSize, inputSize),
                              jnp.float32, -stdv, stdv)
    w_hh = jax.random.uniform(k_whh, (4 * hiddenSize, hiddenSize),
                              jnp.float32, -stdv, stdv)
    b_ih = jax.random.uniform(k_bih, (4 * hiddenSize,),
                              jnp.float32, -stdv, stdv)
    b_hh = jax.random.uniform(k_bhh, (4 * hiddenSize,),
                              jnp.float32, -stdv, stdv)

    x = jax.random.normal(k_x, (batch, inputSize), jnp.float32)
    h0 = jax.random.normal(k_h, (batch, hiddenSize), jnp.float32)
    c0 = jax.random.normal(k_c, (batch, hiddenSize), jnp.float32)

    h1, c1 = lstm_cell_tied_forward(x, w_ih, w_hh, b_ih, b_hh,
                                    hidden=(h0, c0))
    jax.block_until_ready((h1, c1))

    # Sanity check against pure-JAX reference.
    ref_h1, ref_c1 = _reference_cell(x, w_ih, w_hh, b_ih, b_hh, h0, c0)
    assert h1.shape == (batch, hiddenSize)
    assert c1.shape == (batch, hiddenSize)
    assert jnp.allclose(h1, ref_h1, atol=1e-5, rtol=1e-5)
    assert jnp.allclose(c1, ref_c1, atol=1e-5, rtol=1e-5)

    print("KERNEL_OK")
</pallas_src>

<mosaic_0001>
module attributes {stable_mosaic.version = 11 : i64} {
  func.func @_lstm_cell_kernel(%arg0: i32, %arg1: memref<8x256xf32, #tpu.memory_space<vmem>>, %arg2: memref<256x512xf32, #tpu.memory_space<vmem>>, %arg3: memref<1x512xf32, #tpu.memory_space<vmem>>, %arg4: memref<8x128xf32, #tpu.memory_space<vmem>>, %arg5: memref<8x128xf32, #tpu.memory_space<vmem>>, %arg6: memref<8x128xf32, #tpu.memory_space<vmem>>) attributes {dimension_semantics = [#tpu.dimension_semantics<parallel>], iteration_bounds = array<i64: 1>, scalar_prefetch = 0 : i64, scratch_operands = 0 : i64, tpu.core_type = #tpu.core_type<tc>, window_params = [{transform_indices = @transform_0, window_bounds = array<i64: 8, 256>}, {pipeline_mode = #tpu.pipeline_mode<synchronous>, transform_indices = @transform_1, window_bounds = array<i64: 256, 512>}, {pipeline_mode = #tpu.pipeline_mode<synchronous>, transform_indices = @transform_2, window_bounds = array<i64: 1, 512>}, {transform_indices = @transform_3, window_bounds = array<i64: 8, 128>}, {transform_indices = @transform_4, window_bounds = array<i64: 8, 128>}, {transform_indices = @transform_5, window_bounds = array<i64: 8, 128>}]} {
    %c0 = arith.constant 0 : index
    %c0_0 = arith.constant 0 : index
    %0 = vector.load %arg1[%c0, %c0_0] : memref<8x256xf32, #tpu.memory_space<vmem>>, vector<8x256xf32>
    %c0_1 = arith.constant 0 : index
    %c0_2 = arith.constant 0 : index
    %1 = vector.load %arg2[%c0_1, %c0_2] : memref<256x512xf32, #tpu.memory_space<vmem>>, vector<256x512xf32>
    %cst = arith.constant dense<0.000000e+00> : vector<8x512xf32>
    %2 = tpu.matmul %0, %1, %cst {dimension_numbers = #tpu.dot_dimension_numbers<[1], [0], [0], [1], [0, 0, 1, 1], [], []>} : vector<8x256xf32>, vector<256x512xf32>, vector<8x512xf32> -> vector<8x512xf32>
    %c0_3 = arith.constant 0 : index
    %c0_4 = arith.constant 0 : index
    %3 = vector.load %arg3[%c0_3, %c0_4] : memref<1x512xf32, #tpu.memory_space<vmem>>, vector<1x512xf32>
    %4 = vector.broadcast %3 : vector<1x512xf32> to vector<8x512xf32>
    %5 = arith.addf %2, %4 : vector<8x512xf32>
    %6 = vector.extract_strided_slice %5 {offsets = [0, 0], sizes = [8, 128], strides = [1, 1]} : vector<8x512xf32> to vector<8x128xf32>
    %cst_5 = arith.constant 5.000000e-01 : f32
    %7 = vector.broadcast %cst_5 : f32 to vector<8x128xf32>
    %8 = arith.mulf %7, %6 : vector<8x128xf32>
    %9 = math.tanh %8 : vector<8x128xf32>
    %cst_6 = arith.constant 5.000000e-01 : f32
    %10 = vector.broadcast %cst_6 : f32 to vector<8x128xf32>
    %11 = arith.mulf %10, %9 : vector<8x128xf32>
    %cst_7 = arith.constant 5.000000e-01 : f32
    %12 = vector.broadcast %cst_7 : f32 to vector<8x128xf32>
    %13 = arith.addf %11, %12 : vector<8x128xf32>
    %14 = vector.extract_strided_slice %5 {offsets = [0, 128], sizes = [8, 128], strides = [1, 1]} : vector<8x512xf32> to vector<8x128xf32>
    %cst_8 = arith.constant 5.000000e-01 : f32
    %15 = vector.broadcast %cst_8 : f32 to vector<8x128xf32>
    %16 = arith.mulf %15, %14 : vector<8x128xf32>
    %17 = math.tanh %16 : vector<8x128xf32>
    %cst_9 = arith.constant 5.000000e-01 : f32
    %18 = vector.broadcast %cst_9 : f32 to vector<8x128xf32>
    %19 = arith.mulf %18, %17 : vector<8x128xf32>
    %cst_10 = arith.constant 5.000000e-01 : f32
    %20 = vector.broadcast %cst_10 : f32 to vector<8x128xf32>
    %21 = arith.addf %19, %20 : vector<8x128xf32>
    %22 = vector.extract_strided_slice %5 {offsets = [0, 256], sizes = [8, 128], strides = [1, 1]} : vector<8x512xf32> to vector<8x128xf32>
    %23 = math.tanh %22 : vector<8x128xf32>
    %24 = vector.extract_strided_slice %5 {offsets = [0, 384], sizes = [8, 128], strides = [1, 1]} : vector<8x512xf32> to vector<8x128xf32>
    %cst_11 = arith.constant 5.000000e-01 : f32
    %25 = vector.broadcast %cst_11 : f32 to vector<8x128xf32>
    %26 = arith.mulf %25, %24 : vector<8x128xf32>
    %27 = math.tanh %26 : vector<8x128xf32>
    %cst_12 = arith.constant 5.000000e-01 : f32
    %28 = vector.broadcast %cst_12 : f32 to vector<8x128xf32>
    %29 = arith.mulf %28, %27 : vector<8x128xf32>
    %cst_13 = arith.constant 5.000000e-01 : f32
    %30 = vector.broadcast %cst_13 : f32 to vector<8x128xf32>
    %31 = arith.addf %29, %30 : vector<8x128xf32>
    %c0_14 = arith.constant 0 : index
    %c0_15 = arith.constant 0 : index
    %32 = vector.load %arg4[%c0_14, %c0_15] : memref<8x128xf32, #tpu.memory_space<vmem>>, vector<8x128xf32>
    %33 = arith.mulf %21, %32 : vector<8x128xf32>
    %34 = arith.mulf %13, %23 : vector<8x128xf32>
    %35 = arith.addf %33, %34 : vector<8x128xf32>
    %36 = math.tanh %35 : vector<8x128xf32>
    %37 = arith.mulf %31, %36 : vector<8x128xf32>
    %c0_16 = arith.constant 0 : index
    %c0_17 = arith.constant 0 : index
    %38 = vector.load %arg6[%c0_16, %c0_17] : memref<8x128xf32, #tpu.memory_space<vmem>>, vector<8x128xf32>
    tpu.vector_store %arg6[%c0_16, %c0_17], %35 {strides = array<i32>} : memref<8x128xf32, #tpu.memory_space<vmem>>, vector<8x128xf32>,
    %c0_18 = arith.constant 0 : index
    %c0_19 = arith.constant 0 : index
    %39 = vector.load %arg5[%c0_18, %c0_19] : memref<8x128xf32, #tpu.memory_space<vmem>>, vector<8x128xf32>
    tpu.vector_store %arg5[%c0_18, %c0_19], %37 {strides = array<i32>} : memref<8x128xf32, #tpu.memory_space<vmem>>, vector<8x128xf32>,
    return
  }
  func.func @transform_0(%arg0: i32) -> (i32, i32) {
    %c0_i32 = arith.constant 0 : i32
    %c0_i32_0 = arith.constant 0 : i32
    return %arg0, %c0_i32 : i32, i32
  }
  func.func @transform_1(%arg0: i32) -> (i32, i32) {
    %c0_i32 = arith.constant 0 : i32
    %c0_i32_0 = arith.constant 0 : i32
    %c0_i32_1 = arith.constant 0 : i32
    return %c0_i32, %c0_i32_0 : i32, i32
  }
  func.func @transform_2(%arg0: i32) -> (i32, i32) {
    %c0_i32 = arith.constant 0 : i32
    %c0_i32_0 = arith.constant 0 : i32
    %c0_i32_1 = arith.constant 0 : i32
    return %c0_i32, %c0_i32_0 : i32, i32
  }
  func.func @transform_3(%arg0: i32) -> (i32, i32) {
    %c0_i32 = arith.constant 0 : i32
    %c0_i32_0 = arith.constant 0 : i32
    return %arg0, %c0_i32 : i32, i32
  }
  func.func @transform_4(%arg0: i32) -> (i32, i32) {
    %c0_i32 = arith.constant 0 : i32
    %c0_i32_0 = arith.constant 0 : i32
    return %arg0, %c0_i32 : i32, i32
  }
  func.func @transform_5(%arg0: i32) -> (i32, i32) {
    %c0_i32 = arith.constant 0 : i32
    %c0_i32_0 = arith.constant 0 : i32
    return %arg0, %c0_i32 : i32, i32
  }
}

</mosaic_0001>

<bundles_post_ra>
// kernel: tpu_custom_call.1
= control target key start
LH: loop header
LB: loop body
LE: loop exit
PB: predicated region body
PF: predicated region fallthrough
CT: control target
= control target key end

     0   :  { %11 = vsyncpa [#allocation3], 0  ;;  %s766_s0 = inlined_call_operand.hbm [shape: f32[8,256], index: 0, kind: input, shape index: {}]   ;;  %s767_s1 = inlined_call_operand.hbm [shape: f32[256,512], index: 1, kind: input, shape index: {}]   ;;  %s768_s2 = inlined_call_operand.hbm [shape: f32[1,512], index: 2, kind: input, shape index: {}]   ;;  %s769_s3 = inlined_call_operand.vmem [shape: f32[8,128], index: 3, kind: input, shape index: {}]   ;;  %s770_s4 = inlined_call_operand.hbm [shape: f32[8,128], index: 4, kind: output, shape index: {0}]   ;;  %s771_s5 = inlined_call_operand.hbm [shape: f32[8,128], index: 5, kind: output, shape index: {1}]  }
   0x1   :  { %12 = vsyncpa [#allocation6], 0 }
   0x2   :  { %13 = vsyncpa [#allocation4], 0 }
   0x3   :  { %14 = vsyncpa [#allocation10], 0  ;;  %s666_s18 = smov [#allocation5]   ;;  %s548_s22 = scalar_lea.hbm %s767_s1, 16384 }
   0x4   :  { %s30_s19 = sshll.u32 %s666_s18, 4  ;;  %p549_p0 = scmp.ne.s32.totalorder %s767_s1, %s548_s22  ;;  %s31_s19 = int_to_ptr.vmem [resolvable:$true] %s30_s19 }
   0x5   :  { %p552_p1 = scmp.lt.u32.totalorder %s548_s22, %s767_s1 }
   0x7   :  { %p554_p2 = pnand %p552_p1, %p549_p0 }
   0x9   :  { %557 = shalt.err (!%p554_p2)
}
   0xa   :  { %s558_s27 = scalar_lea.vmem %s31_s19, 16384  ;;  %p563_p4 = scmp.lt.s32.totalorder %s31_s19, %s31_s19 }
   0xb   :  { %p559_p3 = scmp.ne.s32.totalorder %s31_s19, %s558_s27  ;;  %p564_p5 = scmp.lt.s32.totalorder %s558_s27, %s558_s27 }
   0xd   :  { %p565_p6 = por %p564_p5, %p563_p4 }
   0xf   :  { %p566_p7 = pnand %p565_p6, %p559_p3 }
  0x11   :  { %569 = shalt.err (!%p566_p7)
}
  0x12   :  { %s667_s28 = smov 512   ;;  %s668_s29 = smov 32  }
  0x13   :  { %36 = dma.hbm_to_vmem [thread:$0]  %s767_s1, 16384, %s31_s19, [#allocation6], %s667_s28, %s667_s28, %s668_s29  }
  0x14   :  { %s669_s7 = smov [#allocation2]   ;;  %s670_s9 = smov [#allocation7]  }
  0x15   :  { %s21_s8 = sshll.u32 %s669_s7, 4  ;;  %s43_s10 = sshll.u32 %s670_s9, 4  ;;  %s22_s8 = int_to_ptr.vmem [resolvable:$true] %s21_s8  ;;  %s44_s10 = int_to_ptr.vmem [resolvable:$true] %s43_s10 }
  0x16   :  { %s570_s13 = scalar_lea.hbm %s766_s0, 256 }
  0x17   :  { %p571_p8 = scmp.ne.s32.totalorder %s766_s0, %s570_s13  ;;  %p574_p9 = scmp.lt.u32.totalorder %s570_s13, %s766_s0 }
  0x19   :  { %p576_p10 = pnand %p574_p9, %p571_p8 }
  0x1b   :  { %579 = shalt.err (!%p576_p10)
}
  0x1c   :  { %s580_s1 = scalar_lea.vmem %s22_s8, 256  ;;  %p585_p12 = scmp.lt.s32.totalorder %s22_s8, %s22_s8 }
  0x1d   :  { %p581_p11 = scmp.ne.s32.totalorder %s22_s8, %s580_s1  ;;  %p586_p13 = scmp.lt.s32.totalorder %s580_s1, %s580_s1 }
  0x1f   :  { %p587_p0 = por %p586_p13, %p585_p12 }
  0x21   :  { %p588_p1 = pnand %p587_p0, %p581_p11 }
  0x23   :  { %591 = shalt.err (!%p588_p1)
}
  0x24   :  { %24 = dma.hbm_to_vmem [thread:$0]  %s766_s0, 256, %s22_s8, [#allocation3]  }
  0x25   :  { %s592_s22 = scalar_lea.hbm %s768_s2, 64 }
  0x26   :  { %p593_p2 = scmp.ne.s32.totalorder %s768_s2, %s592_s22  ;;  %p596_p3 = scmp.lt.u32.totalorder %s592_s22, %s768_s2 }
  0x28   :  { %p598_p4 = pnand %p596_p3, %p593_p2 }
  0x2a   :  { %601 = shalt.err (!%p598_p4)
}
  0x2b   :  { %s602_s27 = scalar_lea.vmem %s44_s10, 64  ;;  %p607_p6 = scmp.lt.s32.totalorder %s44_s10, %s44_s10 }
  0x2c   :  { %p603_p5 = scmp.ne.s32.totalorder %s44_s10, %s602_s27  ;;  %p608_p7 = scmp.lt.s32.totalorder %s602_s27, %s602_s27 }
  0x2e   :  { %p609_p8 = por %p608_p7, %p607_p6 }
  0x30   :  { %p610_p9 = pnand %p609_p8, %p603_p5 }
  0x32   :  { %613 = shalt.err (!%p610_p9)
}
  0x33   :  { %46 = dma.hbm_to_vmem [thread:$0]  %s768_s2, 64, %s44_s10, [#allocation6]  }
  0x34   :  { %658 = dma.done.wait [#allocation3], 256  }
  0x35   :  { %659 = vsyncadd [#allocation3], 4294967040 }
  0x36   :  { %660 = dma.done.wait [#allocation6], 16448  }
  0x37   :  { %661 = vsyncadd [#allocation6], 4294950848  ;;  %v61_v0 = vld [vmem:[#allocation5 + $0x8] sm:$0xff]  ;;  %v60_v2 = vld [vmem:[#allocation5] sm:$0xff]  ;;  %s671_s30 = smov [#allocation9]  }
  0x38   :  { %v65_v1 = vld [vmem:[#allocation5 + $0x28] sm:$0xff]  ;;  %v64_v4 = vld [vmem:[#allocation5 + $0x20] sm:$0xff]  ;;  %v63_v11 = vld [vmem:[#allocation5 + $0x18] sm:$0xff]  ;;  %s389_s6 = sshll.u32 %s671_s30, 4  ;;  %s390_s6 = int_to_ptr.vmem [resolvable:$true] %s389_s6 }
  0x39   :  { %v403_v3 = vpack.c.bf16 %v65_v1, %v61_v0  ;;  %v69_v5 = vld [vmem:[#allocation5 + $0x48] sm:$0xff]  ;;  %v405_v7 = vpack.c.bf16 %v64_v4, %v60_v2  ;;  %v68_v9 = vld [vmem:[#allocation5 + $0x40] sm:$0xff]  ;;  %v67_v12 = vld [vmem:[#allocation5 + $0x38] sm:$0xff]  ;;  %s614_s7 = scalar_lea.vmem %s390_s6, 128  ;;  %p619_p11 = scmp.lt.s32.totalorder %s390_s6, %s390_s6 }
  0x3a   :  { %v73_v6 = vld [vmem:[#allocation5 + $0x68] sm:$0xff]  ;;  %v72_v10 = vld [vmem:[#allocation5 + $0x60] sm:$0xff]  ;;  %v62_v13 = vld [vmem:[#allocation5 + $0x10] sm:$0xff]  ;;  %v467_v16 = vpack.c.bf16 %v67_v12, %v63_v11  ;;  %p615_p10 = scmp.ne.s32.totalorder %s390_s6, %s614_s7  ;;  %p620_p12 = scmp.lt.s32.totalorder %s614_s7, %s614_s7 }
  0x3b   :  { %v407_v8 = vpack.c.bf16 %v73_v6, %v69_v5  ;;  %404 = vmatprep.subr.bf16.mxu0 %v403_v3  ;;  %v66_v14 = vld [vmem:[#allocation5 + $0x30] sm:$0xff]  ;;  %v409_v15 = vpack.c.bf16 %v72_v10, %v68_v9  ;;  %v77_v18 = vld [vmem:[#allocation5 + $0x88] sm:$0xff]  ;;  %v76_v20 = vld [vmem:[#allocation5 + $0x80] sm:$0xff] }
  0x3c   :  { %406 = vmatpush1.bf16.msra.mxu0 %v405_v7  ;;  %v469_v17 = vpack.c.bf16 %v66_v14, %v62_v13  ;;  %v81_v19 = vld [vmem:[#allocation5 + $0xa8] sm:$0xff]  ;;  %v80_v22 = vld [vmem:[#allocation5 + $0xa0] sm:$0xff]  ;;  %v71_v23 = vld [vmem:[#allocation5 + $0x58] sm:$0xff]  ;;  %468 = vmatprep.subr.bf16.mxu1 %v467_v16  ;;  %p621_p13 = por %p620_p12, %p619_p11 }
  0x3d   :  { %408 = vmatprep.subr.bf16.mxu0 %v407_v8  ;;  %v411_v21 = vpack.c.bf16 %v81_v19, %v77_v18  ;;  %v75_v24 = vld [vmem:[#allocation5 + $0x78] sm:$0xff]  ;;  %v70_v26 = vld [vmem:[#allocation5 + $0x50] sm:$0xff]  ;;  %v85_v28 = vld [vmem:[#allocation5 + $0xc8] sm:$0xff]  ;;  %v413_v31 = vpack.c.bf16 %v80_v22, %v76_v20 }
  0x3e   :  { %v471_v25 = vpack.c.bf16 %v75_v24, %v71_v23  ;;  %v74_v27 = vld [vmem:[#allocation5 + $0x70] sm:$0xff]  ;;  %470 = vmatpush1.bf16.msra.mxu1 %v469_v17  ;;  %v89_v30 = vld [vmem:[#allocation5 + $0xe8] sm:$0xff]  ;;  %v79_v32 = vld [vmem:[#allocation5 + $0x98] sm:$0xff]  ;;  %p622_p0 = pnand %p621_p13, %p615_p10 }
  0x3f   :  { %v473_v29 = vpack.c.bf16 %v74_v27, %v70_v26  ;;  %v83_v33 = vld [vmem:[#allocation5 + $0xb8] sm:$0xff]  ;;  %v78_v34 = vld [vmem:[#allocation5 + $0x90] sm:$0xff]  ;;  %v415_v35 = vpack.c.bf16 %v89_v30, %v85_v28  ;;  %v84_v36 = vld [vmem:[#allocation5 + $0xc0] sm:$0xff] }
  0x40   :  { %410 = vmatpush1.bf16.msra.mxu0 %v409_v15  ;;  %472 = vmatprep.subr.bf16.mxu1 %v471_v25  ;;  %v88_v37 = vld [vmem:[#allocation5 + $0xe0] sm:$0xff]  ;;  %v475_v38 = vpack.c.bf16 %v83_v33, %v79_v32  ;;  %v82_v39 = vld [vmem:[#allocation5 + $0xb0] sm:$0xff]  ;;  %v93_v40 = vld [vmem:[#allocation5 + $0x108] sm:$0xff] }
  0x41   :  { %412 = vmatprep.subr.bf16.mxu0 %v411_v21  ;;  %v97_v41 = vld [vmem:[#allocation5 + $0x128] sm:$0xff]  ;;  %v87_v42 = vld [vmem:[#allocation5 + $0xd8] sm:$0xff]  ;;  %v477_v43 = vpack.c.bf16 %v82_v39, %v78_v34  ;;  %v417_v45 = vpack.c.bf16 %v88_v37, %v84_v36  ;;  %v92_v46 = vld [vmem:[#allocation5 + $0x100] sm:$0xff] }
  0x42   :  { %474 = vmatpush1.bf16.msra.mxu1 %v473_v29  ;;  %v91_v44 = vld [vmem:[#allocation5 + $0xf8] sm:$0xff]  ;;  %v86_v48 = vld [vmem:[#allocation5 + $0xd0] sm:$0xff]  ;;  %v419_v50 = vpack.c.bf16 %v97_v41, %v93_v40  ;;  %v96_v51 = vld [vmem:[#allocation5 + $0x120] sm:$0xff] }
  0x43   :  { %476 = vmatprep.subr.bf16.mxu1 %v475_v38  ;;  %v479_v47 = vpack.c.bf16 %v91_v44, %v87_v42  ;;  %v90_v49 = vld [vmem:[#allocation5 + $0xf0] sm:$0xff]  ;;  %v95_v52 = vld [vmem:[#allocation5 + $0x118] sm:$0xff]  ;;  %v101_v54 = vld [vmem:[#allocation5 + $0x148] sm:$0xff]  ;;  %v421_v57 = vpack.c.bf16 %v96_v51, %v92_v46 }
  0x44   :  { %414 = vmatpush1.bf16.msra.mxu0 %v413_v31  ;;  %v99_v53 = vld [vmem:[#allocation5 + $0x138] sm:$0xff]  ;;  %v105_v55 = vld [vmem:[#allocation5 + $0x168] sm:$0xff]  ;;  %v481_v56 = vpack.c.bf16 %v90_v49, %v86_v48  ;;  %v100_v58 = vld [vmem:[#allocation5 + $0x140] sm:$0xff] }
  0x45   :  { %416 = vmatprep.subr.bf16.mxu0 %v415_v35  ;;  %v483_v59 = vpack.c.bf16 %v99_v53, %v95_v52  ;;  %v94_v60 = vld [vmem:[#allocation5 + $0x110] sm:$0xff]  ;;  %v423_v62 = vpack.c.bf16 %v105_v55, %v101_v54  ;;  %v104_v63 = vld [vmem:[#allocation5 + $0x160] sm:$0xff]  ;;  %v103_v0 = vld [vmem:[#allocation5 + $0x158] sm:$0xff] }
  0x46   :  { %478 = vmatpush1.bf16.msra.mxu1 %v477_v43  ;;  %v98_v61 = vld [vmem:[#allocation5 + $0x130] sm:$0xff]  ;;  %v107_v1 = vld [vmem:[#allocation5 + $0x178] sm:$0xff]  ;;  %v109_v2 = vld [vmem:[#allocation5 + $0x188] sm:$0xff]  ;;  %v425_v5 = vpack.c.bf16 %v104_v63, %v100_v58 }
  0x47   :  { %480 = vmatprep.subr.bf16.mxu1 %v479_v47  ;;  %v113_v3 = vld [vmem:[#allocation5 + $0x1a8] sm:$0xff]  ;;  %v485_v4 = vpack.c.bf16 %v98_v61, %v94_v60  ;;  %v108_v6 = vld [vmem:[#allocation5 + $0x180] sm:$0xff]  ;;  %v487_v7 = vpack.c.bf16 %v107_v1, %v103_v0  ;;  %v102_v8 = vld [vmem:[#allocation5 + $0x150] sm:$0xff] }
  0x48   :  { %418 = vmatpush1.bf16.msra.mxu0 %v417_v45  ;;  %v106_v9 = vld [vmem:[#allocation5 + $0x170] sm:$0xff]  ;;  %v427_v10 = vpack.c.bf16 %v113_v3, %v109_v2  ;;  %v112_v11 = vld [vmem:[#allocation5 + $0x1a0] sm:$0xff]  ;;  %v111_v12 = vld [vmem:[#allocation5 + $0x198] sm:$0xff] }
  0x49   :  { %420 = vmatprep.subr.bf16.mxu0 %v419_v50  ;;  %v115_v13 = vld [vmem:[#allocation5 + $0x1b8] sm:$0xff]  ;;  %v117_v14 = vld [vmem:[#allocation5 + $0x1c8] sm:$0xff]  ;;  %v489_v16 = vpack.c.bf16 %v106_v9, %v102_v8  ;;  %v429_v17 = vpack.c.bf16 %v112_v11, %v108_v6  ;;  %v116_v18 = vld [vmem:[#allocation5 + $0x1c0] sm:$0xff] }
  0x4a   :  { %482 = vmatpush1.bf16.msra.mxu1 %v481_v56  ;;  %v121_v15 = vld [vmem:[#allocation5 + $0x1e8] sm:$0xff]  ;;  %v491_v19 = vpack.c.bf16 %v115_v13, %v111_v12  ;;  %v110_v20 = vld [vmem:[#allocation5 + $0x190] sm:$0xff]  ;;  %v120_v23 = vld [vmem:[#allocation5 + $0x1e0] sm:$0xff] }
  0x4b   :  { %484 = vmatprep.subr.bf16.mxu1 %v483_v59  ;;  %v114_v21 = vld [vmem:[#allocation5 + $0x1b0] sm:$0xff]  ;;  %v431_v22 = vpack.c.bf16 %v121_v15, %v117_v14  ;;  %v119_v24 = vld [vmem:[#allocation5 + $0x1d8] sm:$0xff]  ;;  %v125_v26 = vld [vmem:[#allocation5 + $0x208] sm:$0xff]  ;;  %v433_v29 = vpack.c.bf16 %v120_v23, %v116_v18 }
  0x4c   :  { %422 = vmatpush1.bf16.msra.mxu0 %v421_v57  ;;  %v123_v25 = vld [vmem:[#allocation5 + $0x1f8] sm:$0xff]  ;;  %v129_v27 = vld [vmem:[#allocation5 + $0x228] sm:$0xff]  ;;  %v493_v28 = vpack.c.bf16 %v114_v21, %v110_v20  ;;  %v124_v30 = vld [vmem:[#allocation5 + $0x200] sm:$0xff] }
  0x4d   :  { %424 = vmatprep.subr.bf16.mxu0 %v423_v62  ;;  %v495_v31 = vpack.c.bf16 %v123_v25, %v119_v24  ;;  %v118_v32 = vld [vmem:[#allocation5 + $0x1d0] sm:$0xff]  ;;  %v435_v34 = vpack.c.bf16 %v129_v27, %v125_v26  ;;  %v128_v35 = vld [vmem:[#allocation5 + $0x220] sm:$0xff]  ;;  %v127_v36 = vld [vmem:[#allocation5 + $0x218] sm:$0xff] }
  0x4e   :  { %486 = vmatpush1.bf16.msra.mxu1 %v485_v4  ;;  %v122_v33 = vld [vmem:[#allocation5 + $0x1f0] sm:$0xff]  ;;  %v131_v37 = vld [vmem:[#allocation5 + $0x238] sm:$0xff]  ;;  %v133_v38 = vld [vmem:[#allocation5 + $0x248] sm:$0xff]  ;;  %v437_v41 = vpack.c.bf16 %v128_v35, %v124_v30 }
  0x4f   :  { %488 = vmatprep.subr.bf16.mxu1 %v487_v7  ;;  %v137_v39 = vld [vmem:[#allocation5 + $0x268] sm:$0xff]  ;;  %v497_v40 = vpack.c.bf16 %v122_v33, %v118_v32  ;;  %v132_v42 = vld [vmem:[#allocation5 + $0x240] sm:$0xff]  ;;  %v499_v43 = vpack.c.bf16 %v131_v37, %v127_v36  ;;  %v126_v44 = vld [vmem:[#allocation5 + $0x210] sm:$0xff] }
  0x50   :  { %426 = vmatpush1.bf16.msra.mxu0 %v425_v5  ;;  %v130_v45 = vld [vmem:[#allocation5 + $0x230] sm:$0xff]  ;;  %v439_v46 = vpack.c.bf16 %v137_v39, %v133_v38  ;;  %v136_v47 = vld [vmem:[#allocation5 + $0x260] sm:$0xff]  ;;  %v135_v48 = vld [vmem:[#allocation5 + $0x258] sm:$0xff] }
  0x51   :  { %428 = vmatprep.subr.bf16.mxu0 %v427_v10  ;;  %v139_v49 = vld [vmem:[#allocation5 + $0x278] sm:$0xff]  ;;  %v141_v50 = vld [vmem:[#allocation5 + $0x288] sm:$0xff]  ;;  %v501_v52 = vpack.c.bf16 %v130_v45, %v126_v44  ;;  %v441_v53 = vpack.c.bf16 %v136_v47, %v132_v42  ;;  %v140_v54 = vld [vmem:[#allocation5 + $0x280] sm:$0xff] }
  0x52   :  { %490 = vmatpush1.bf16.msra.mxu1 %v489_v16  ;;  %v145_v51 = vld [vmem:[#allocation5 + $0x2a8] sm:$0xff]  ;;  %v503_v55 = vpack.c.bf16 %v139_v49, %v135_v48  ;;  %v134_v56 = vld [vmem:[#allocation5 + $0x250] sm:$0xff]  ;;  %v144_v59 = vld [vmem:[#allocation5 + $0x2a0] sm:$0xff] }
  0x53   :  { %492 = vmatprep.subr.bf16.mxu1 %v491_v19  ;;  %v138_v57 = vld [vmem:[#allocation5 + $0x270] sm:$0xff]  ;;  %v443_v58 = vpack.c.bf16 %v145_v51, %v141_v50  ;;  %v143_v60 = vld [vmem:[#allocation5 + $0x298] sm:$0xff]  ;;  %v149_v62 = vld [vmem:[#allocation5 + $0x2c8] sm:$0xff]  ;;  %v445_v2 = vpack.c.bf16 %v144_v59, %v140_v54 }
  0x54   :  { %430 = vmatpush1.bf16.msra.mxu0 %v429_v17  ;;  %v147_v61 = vld [vmem:[#allocation5 + $0x2b8] sm:$0xff]  ;;  %v153_v63 = vld [vmem:[#allocation5 + $0x2e8] sm:$0xff]  ;;  %v505_v0 = vpack.c.bf16 %v138_v57, %v134_v56  ;;  %v148_v1 = vld [vmem:[#allocation5 + $0x2c0] sm:$0xff] }
  0x55   :  { %432 = vmatprep.subr.bf16.mxu0 %v431_v22  ;;  %v507_v3 = vpack.c.bf16 %v147_v61, %v143_v60  ;;  %v142_v4 = vld [vmem:[#allocation5 + $0x290] sm:$0xff]  ;;  %v59_v6 = vld [vmem:[#allocation2 + $0x8] sm:$0xff]  ;;  %v447_v7 = vpack.c.bf16 %v153_v63, %v149_v62  ;;  %v152_v8 = vld [vmem:[#allocation5 + $0x2e0] sm:$0xff] }
  0x56   :  { %494 = vmatpush1.bf16.msra.mxu1 %v493_v28  ;;  %v146_v5 = vld [vmem:[#allocation5 + $0x2b0] sm:$0xff]  ;;  %v151_v9 = vld [vmem:[#allocation5 + $0x2d8] sm:$0xff]  ;;  %274 = vmatprep.mubr.f32.mxu0 %v59_v6  ;;  %v157_v11 = vld [vmem:[#allocation5 + $0x308] sm:$0xff]  ;;  %v449_v14 = vpack.c.bf16 %v152_v8, %v148_v1 }
  0x57   :  { %496 = vmatprep.subr.bf16.mxu1 %v495_v31  ;;  %v155_v10 = vld [vmem:[#allocation5 + $0x2f8] sm:$0xff]  ;;  %v161_v12 = vld [vmem:[#allocation5 + $0x328] sm:$0xff]  ;;  %345 = vmatprep.mubr.f32.mxu1 %v59_v6  ;;  %v509_v13 = vpack.c.bf16 %v146_v5, %v142_v4  ;;  %v156_v15 = vld [vmem:[#allocation5 + $0x300] sm:$0xff] }
  0x58   :  { %434 = vmatpush1.bf16.msra.mxu0 %v433_v29  ;;  %v511_v16 = vpack.c.bf16 %v155_v10, %v151_v9  ;;  %v150_v17 = vld [vmem:[#allocation5 + $0x2d0] sm:$0xff]  ;;  %v451_v19 = vpack.c.bf16 %v161_v12, %v157_v11  ;;  %v160_v20 = vld [vmem:[#allocation5 + $0x320] sm:$0xff]  ;;  %v159_v21 = vld [vmem:[#allocation5 + $0x318] sm:$0xff] }
  0x59   :  { %436 = vmatprep.subr.bf16.mxu0 %v435_v34  ;;  %v154_v18 = vld [vmem:[#allocation5 + $0x2f0] sm:$0xff]  ;;  %v163_v22 = vld [vmem:[#allocation5 + $0x338] sm:$0xff]  ;;  %v165_v23 = vld [vmem:[#allocation5 + $0x348] sm:$0xff]  ;;  %v453_v26 = vpack.c.bf16 %v160_v20, %v156_v15 }
  0x5a   :  { %498 = vmatpush1.bf16.msra.mxu1 %v497_v40  ;;  %v169_v24 = vld [vmem:[#allocation5 + $0x368] sm:$0xff]  ;;  %v513_v25 = vpack.c.bf16 %v154_v18, %v150_v17  ;;  %v164_v27 = vld [vmem:[#allocation5 + $0x340] sm:$0xff]  ;;  %v515_v28 = vpack.c.bf16 %v163_v22, %v159_v21  ;;  %v158_v29 = vld [vmem:[#allocation5 + $0x310] sm:$0xff] }
  0x5b   :  { %500 = vmatprep.subr.bf16.mxu1 %v499_v43  ;;  %v162_v30 = vld [vmem:[#allocation5 + $0x330] sm:$0xff]  ;;  %v455_v31 = vpack.c.bf16 %v169_v24, %v165_v23  ;;  %v168_v32 = vld [vmem:[#allocation5 + $0x360] sm:$0xff]  ;;  %v167_v33 = vld [vmem:[#allocation5 + $0x358] sm:$0xff] }
  0x5c   :  { %438 = vmatpush1.bf16.msra.mxu0 %v437_v41  ;;  %v171_v34 = vld [vmem:[#allocation5 + $0x378] sm:$0xff]  ;;  %v173_v35 = vld [vmem:[#allocation5 + $0x388] sm:$0xff]  ;;  %v517_v37 = vpack.c.bf16 %v162_v30, %v158_v29  ;;  %v457_v38 = vpack.c.bf16 %v168_v32, %v164_v27  ;;  %v172_v39 = vld [vmem:[#allocation5 + $0x380] sm:$0xff] }
  0x5d   :  { %440 = vmatprep.subr.bf16.mxu0 %v439_v46  ;;  %v177_v36 = vld [vmem:[#allocation5 + $0x3a8] sm:$0xff]  ;;  %v519_v40 = vpack.c.bf16 %v171_v34, %v167_v33  ;;  %v166_v41 = vld [vmem:[#allocation5 + $0x350] sm:$0xff]  ;;  %v176_v44 = vld [vmem:[#allocation5 + $0x3a0] sm:$0xff] }
  0x5e   :  { %502 = vmatpush1.bf16.msra.mxu1 %v501_v52  ;;  %v170_v42 = vld [vmem:[#allocation5 + $0x370] sm:$0xff]  ;;  %v459_v43 = vpack.c.bf16 %v177_v36, %v173_v35  ;;  %v175_v45 = vld [vmem:[#allocation5 + $0x398] sm:$0xff]  ;;  %v181_v47 = vld [vmem:[#allocation5 + $0x3c8] sm:$0xff]  ;;  %v461_v50 = vpack.c.bf16 %v176_v44, %v172_v39 }
  0x5f   :  { %504 = vmatprep.subr.bf16.mxu1 %v503_v55  ;;  %v179_v46 = vld [vmem:[#allocation5 + $0x3b8] sm:$0xff]  ;;  %v185_v48 = vld [vmem:[#allocation5 + $0x3e8] sm:$0xff]  ;;  %v521_v49 = vpack.c.bf16 %v170_v42, %v166_v41  ;;  %v180_v51 = vld [vmem:[#allocation5 + $0x3c0] sm:$0xff] }
  0x60   :  { %442 = vmatpush1.bf16.msra.mxu0 %v441_v53  ;;  %v523_v52 = vpack.c.bf16 %v179_v46, %v175_v45  ;;  %v174_v53 = vld [vmem:[#allocation5 + $0x390] sm:$0xff]  ;;  %v463_v55 = vpack.c.bf16 %v185_v48, %v181_v47  ;;  %v184_v56 = vld [vmem:[#allocation5 + $0x3e0] sm:$0xff]  ;;  %v183_v57 = vld [vmem:[#allocation5 + $0x3d8] sm:$0xff] }
  0x61   :  { %444 = vmatprep.subr.bf16.mxu0 %v443_v58  ;;  %v178_v54 = vld [vmem:[#allocation5 + $0x3b0] sm:$0xff]  ;;  %v187_v58 = vld [vmem:[#allocation5 + $0x3f8] sm:$0xff]  ;;  %v465_v60 = vpack.c.bf16 %v184_v56, %v180_v51  ;;  %v188_v5 = vld [vmem:[#allocation7] sm:$0xf] }
  0x62   :  { %506 = vmatpush1.bf16.msra.mxu1 %v505_v0  ;;  %v525_v59 = vpack.c.bf16 %v178_v54, %v174_v53  ;;  %v527_v61 = vpack.c.bf16 %v187_v58, %v183_v57  ;;  %v182_v62 = vld [vmem:[#allocation5 + $0x3d0] sm:$0xff] }
  0x63   :  { %508 = vmatprep.subr.bf16.mxu1 %v507_v3  ;;  %v186_v63 = vld [vmem:[#allocation5 + $0x3f0] sm:$0xff] }
  0x64   :  { %446 = vmatpush1.bf16.msra.mxu0 %v445_v2  ;;  %v529_v0 = vpack.c.bf16 %v186_v63, %v182_v62  ;;  %v58_v1 = vld [vmem:[#allocation2] sm:$0xff]  ;;  %v190_v2 = vlaneseq }
  0x65   :  { %448 = vmatprep.subr.bf16.mxu0 %v447_v7  ;;  %v365_v30 = vld [vmem:[%s769_s3] sm:$0xff] }
  0x66   :  { %510 = vmatpush1.bf16.msra.mxu1 %v509_v13  ;;  %v191_v3 = vshrl.u32 %v190_v2, 7 }
  0x67   :  { %512 = vmatprep.subr.bf16.mxu1 %v511_v16 }
  0x68   :  { %450 = vmatpush1.bf16.msra.mxu0 %v449_v14  ;;  %v192_v4 = vsub.s32 0, %v191_v3  ;;  %v196_v6 = vsub.s32 1, %v191_v3  ;;  %v200_v7 = vsub.s32 2, %v191_v3  ;;  %v204_v14 = vsub.s32 3, %v191_v3 }
  0x69   :  { %452 = vmatprep.subr.bf16.mxu0 %v451_v19 }
  0x6a   :  { %514 = vmatpush1.bf16.msra.mxu1 %v513_v25  ;;  %v193_v8 = vrot.slane %v188_v5, %v192_v4  ;;  %v197_v9 = vrot.slane %v188_v5, %v196_v6  ;;  %v201_v11 = vrot.slane %v188_v5, %v200_v7  ;;  %v205_v21 = vrot.slane %v188_v5, %v204_v14 }
  0x6b   :  { %516 = vmatprep.subr.bf16.mxu1 %v515_v28 }
  0x6c   :  { %454 = vmatpush1.bf16.msra.mxu0 %v453_v26 }
  0x6d   :  { %456 = vmatprep.subr.bf16.mxu0 %v455_v31 }
  0x6e   :  { %518 = vmatpush1.bf16.msra.mxu1 %v517_v37 }
  0x6f   :  { %520 = vmatprep.subr.bf16.mxu1 %v519_v40 }
  0x70   :  { %458 = vmatpush1.bf16.msra.mxu0 %v457_v38 }
  0x71   :  { %460 = vmatprep.subr.bf16.mxu0 %v459_v43 }
  0x72   :  { %522 = vmatpush1.bf16.msra.mxu1 %v521_v49 }
  0x73   :  { %524 = vmatprep.subr.bf16.mxu1 %v523_v52 }
  0x74   :  { %462 = vmatpush1.bf16.msra.mxu0 %v461_v50 }
  0x75   :  { %464 = vmatprep.subr.bf16.mxu0 %v463_v55 }
  0x76   :  { %526 = vmatpush1.bf16.msra.mxu1 %v525_v59 }
  0x77   :  { %528 = vmatprep.subr.bf16.mxu1 %v527_v61 }
  0x78   :  { %466 = vmatpush1.bf16.msra.mxu0 %v465_v60 }
  0x7a   :  { %530 = vmatpush1.bf16.msra.mxu1 %v529_v0 }
  0x7b   :  { %275 = vmatmul.mubr.f32.vlgmr.msra.gmra.mrb[0].mxu0 %v58_v1 }
  0x7d   :  { %346 = vmatmul.mubr.f32.vlgmr.msra.gmra.mrb[0].mxu1 %v58_v1 }
 0x14e   :  { %v276_v10 = vpop.f32.mrb[0].mxu0 }
 0x14f   :  { %v277_v12 = vadd.f32 %v276_v10, %v193_v8  ;;  %v278_v13 = vpop.f32.mrb[1].mxu0 }
 0x150   :  { %v279_v15 = vadd.f32 %v278_v13, %v197_v9  ;;  %v347_v17 = vpop.f32.mrb[0].mxu1 }
 0x151   :  { %v352_v16 = vmul.f32 0.5, %v277_v12  ;;  %v348_v19 = vadd.f32 %v347_v17, %v201_v11  ;;  %v349_v20 = vpop.f32.mrb[1].mxu1 }
 0x152   :  { %v356_v18 = vmul.f32 0.5, %v279_v15  ;;  %v350_v22 = vadd.f32 %v349_v20, %v205_v21 }
 0x153   :  { %538 = vtanh.f32 %v352_v16 }
 0x154   :  { %540 = vtanh.f32 %v356_v18  ;;  %v361_v23 = vmul.f32 0.5, %v350_v22 }
 0x155   :  { %542 = vtanh.f32 %v348_v19 }
 0x156   :  { %544 = vtanh.f32 %v361_v23 }
 0x15d   :  { %v539_v24 = vpop.eup %538 }
 0x15e   :  { %v541_v25 = vpop.eup %540  ;;  %v354_v26 = vmul.f32 0.5, %v539_v24 }
 0x15f   :  { %v543_v27 = vpop.eup %542  ;;  %v358_v28 = vmul.f32 0.5, %v541_v25 }
 0x160   :  { %v355_v29 = vadd.f32 0.5, %v354_v26 }
 0x161   :  { %v359_v31 = vadd.f32 0.5, %v358_v28 }
 0x162   :  { %v367_v32 = vmul.f32 %v543_v27, %v355_v29 }
 0x163   :  { %v366_v33 = vmul.f32 %v365_v30, %v359_v31 }
 0x165   :  { %v368_v34 = vadd.f32 %v367_v32, %v366_v33 }
 0x167   :  { %371 = vst [vmem:[#allocation9] sm:$0xff] %v368_v34  ;;  %546 = vtanh.f32 %v368_v34 }
 0x168   :  { %625 = shalt.err (!%p622_p0)
}
 0x169   :  { %s626_s3 = scalar_lea.hbm %s771_s5, 128 }
 0x16a   :  { %p627_p1 = scmp.ne.s32.totalorder %s771_s5, %s626_s3  ;;  %p630_p2 = scmp.lt.u32.totalorder %s626_s3, %s771_s5 }
 0x16c   :  { %p632_p3 = pnand %p630_p2, %p627_p1 }
 0x16e   :  { %635 = shalt.err (!%p632_p3)
}
 0x16f   :  { %392 = dma.vmem_to_hbm [thread:$0]  %s390_s6, 128, %s771_s5, [#allocation10]   ;;  %v545_v35 = vpop.eup %544 }
 0x170   :  { %v363_v36 = vmul.f32 0.5, %v545_v35  ;;  %s672_s16 = smov [#allocation8]  }
 0x171   :  { %s379_s17 = sshll.u32 %s672_s16, 4  ;;  %v547_v38 = vpop.eup %546  ;;  %s380_s17 = int_to_ptr.vmem [resolvable:$true] %s379_s17 }
 0x172   :  { %v364_v37 = vadd.f32 0.5, %v363_v36  ;;  %s636_s1 = scalar_lea.vmem %s380_s17, 128  ;;  %p641_p5 = scmp.lt.s32.totalorder %s380_s17, %s380_s17 }
 0x173   :  { %p637_p4 = scmp.ne.s32.totalorder %s380_s17, %s636_s1  ;;  %p642_p6 = scmp.lt.s32.totalorder %s636_s1, %s636_s1 }
 0x174   :  { %v370_v39 = vmul.f32 %v547_v38, %v364_v37 }
 0x175   :  { %p643_p7 = por %p642_p6, %p641_p5 }
 0x176   :  { %372 = vst [vmem:[#allocation8] sm:$0xff] %v370_v39 }
 0x177   :  { %p644_p8 = pnand %p643_p7, %p637_p4 }
 0x179   :  { %647 = shalt.err (!%p644_p8)
}
 0x17a   :  { %s648_s5 = scalar_lea.hbm %s770_s4, 128 }
 0x17b   :  { %p649_p9 = scmp.ne.s32.totalorder %s770_s4, %s648_s5  ;;  %p652_p10 = scmp.lt.u32.totalorder %s648_s5, %s770_s4 }
 0x17d   :  { %p654_p11 = pnand %p652_p10, %p649_p9 }
 0x17f   :  { %657 = shalt.err (!%p654_p11)
}
 0x180   :  { %382 = dma.vmem_to_hbm [thread:$0]  %s380_s17, 128, %s770_s4, [#allocation4]  }
 0x181   :  { %662 = dma.done.wait [#allocation4], 128  }
 0x182   :  { %663 = vsyncadd [#allocation4], 4294967168 }
 0x183   :  { %664 = dma.done.wait [#allocation10], 128  }
 0x184   :  { %665 = vsyncadd [#allocation10], 4294967168 }
 0x185   :  { %399 = vsyncpa [#allocation3], 1 }
 0x186   :  { %400 = vsyncpa [#allocation6], 1 }
 0x187   :  { %401 = vsyncpa [#allocation4], 1 }
 0x188   :  { %402 = vsyncpa [#allocation10], 1 }

</bundles_post_ra>
